<compile_context>
chip_gen: v5e
topology: v5e:2x2
jax: 0.10.0
libtpu: 0.0.40
codegen_flags: <defaults>
</compile_context>

<pallas_src>
import numpy as np
import jax
import jax.numpy as jnp
from jax.experimental import pallas as pl
from jax.experimental.pallas import tpu as pltpu


def _cdiv(a, b):
    return -(-a // b)


def _round_up(v, mult):
    return ((v + mult - 1) // mult) * mult


def _vmem_capacity_bytes():
    # Physical per-core VMEM (128 MiB on v5e/v6e, 64 MiB on v7x). Fall back to the
    # smallest (v7x) figure if the query is unavailable on this jax build.
    try:
        return int(pltpu.get_tpu_info().vmem_capacity_bytes)
    except Exception:
        return 64 << 20


def _linear_kernel(x_ref, w_ref, o_ref):
    # x_ref: (TM, K) pipelined tile; w_ref: (K, N) grid-invariant resident weight
    # (already transposed in the wrapper, so no in-kernel XLU transpose).
    # o_ref: (TM, N) = x @ W^T, f32 MXU accumulate.
    o_ref[...] = jnp.dot(
        x_ref[...], w_ref[...], preferred_element_type=jnp.float32
    ).astype(o_ref.dtype)


def spectral1d_forward(x, weights, *, tm=2048):
    """Pallas equivalent of Spectral1dBase.forward: F.linear(x, weights), bias=None.

    x: (..., in_features), weights: (out_features, in_features)
    returns: (..., out_features)
    """
    k = x.shape[-1]
    n = weights.shape[0]
    assert weights.shape[1] == k

    lead = x.shape[:-1]
    m = int(np.prod(lead)) if lead else 1
    if m == 0:
        return jnp.zeros((*lead, n), dtype=x.dtype)

    x2d = x.reshape(m, k)
    # One-time wrapper transpose: MXU contracts K on sublanes, N on lanes, and the
    # grid-invariant weight block never gets re-transposed per grid step.
    w_t = jnp.transpose(weights)  # (K, N)

    itemsize = jnp.dtype(x.dtype).itemsize
    w_itemsize = jnp.dtype(weights.dtype).itemsize

    # ---- VMEM budget & row-tile sizing --------------------------------------
    cap = max(16 << 20, min(_vmem_capacity_bytes() - (24 << 20), 100 << 20))
    w_resident = 2 * k * n * w_itemsize  # budgeted double-buffered (conservative)
    # TODO(synk): add N (and K, with an f32 VMEM accumulator marked 'arbitrary')
    # grid axes once the resident weight alone no longer fits in VMEM; not needed
    # for Spectral1d-sized (in_features x in_features) weights.
    per_row = 2 * (k + n) * itemsize          # double-buffered x + out rows
    tile_budget = max(1 << 20, cap - w_resident - (4 << 20))
    tm_cap = max(8, min(int(tm), (tile_budget // per_row) // 8 * 8))

    # Balanced row tiles with minimal padding (<= 7 extra rows per block).
    nb = _cdiv(m, tm_cap)
    tm_eff = _round_up(_cdiv(m, nb), 8)
    m_pad = nb * tm_eff
    x_p = x2d if m_pad == m else jnp.pad(x2d, ((0, m_pad - m), (0, 0)))

    vmem_need = 2 * tm_eff * (k + n) * itemsize + w_resident
    vmem_limit = int(min(max(2 * vmem_need + (4 << 20), 16 << 20), cap))

    cost = pl.CostEstimate(
        flops=2 * m_pad * k * n,
        transcendentals=0,
        bytes_accessed=(m_pad * k * itemsize      # x read
                        + k * n * w_itemsize      # weight read (own itemsize)
                        + m_pad * n * itemsize),  # output write (unpadded N)
    )

    out2d = pl.pallas_call(
        _linear_kernel,
        out_shape=jax.ShapeDtypeStruct((m_pad, n), x.dtype),
        grid_spec=pltpu.PrefetchScalarGridSpec(
            num_scalar_prefetch=0,
            grid=(nb,),
            in_specs=[
                pl.BlockSpec((tm_eff, k), lambda i: (i, 0)),   # pipelined x tiles
                pl.BlockSpec((k, n), lambda i: (0, 0)),        # resident weight
            ],
            out_specs=pl.BlockSpec((tm_eff, n), lambda i: (i, 0)),
        ),
        compiler_params=pltpu.CompilerParams(
            dimension_semantics=("parallel",),
            vmem_limit_bytes=vmem_limit,
        ),
        cost_estimate=cost,
    )(x_p, w_t)

    if m_pad != m:
        out2d = out2d[:m]
    return out2d.reshape(*lead, n)


def dct_base_matrix(n):
    """Deterministic base_matrix_builder: orthonormal DCT-II matrix (n, n)."""
    kk = np.arange(n)[:, None]
    ii = np.arange(n)[None, :]
    mat = np.cos(np.pi * (2 * ii + 1) * kk / (2.0 * n))
    mat *= np.sqrt(2.0 / n)
    mat[0, :] *= 1.0 / np.sqrt(2.0)
    return jnp.asarray(mat, dtype=jnp.float32)


if __name__ == "__main__":
    in_features = 32  # signal length
    weights = dct_base_matrix(in_features)  # (out_features, in_features)
    key = jax.random.PRNGKey(0)

    # Small case (matches the module's typical (batch, seq, in_features) usage).
    x = jax.random.normal(key, (2, 8, in_features), dtype=jnp.float32)
    out = jax.block_until_ready(spectral1d_forward(x, weights))
    ref = jnp.einsum("bsk,ok->bso", x, weights)
    assert out.shape == (2, 8, in_features)
    np.testing.assert_allclose(np.asarray(out), np.asarray(ref), rtol=1e-5, atol=1e-5)

    # Larger, non-multiple M case to exercise the balanced-tile / minimal-pad path.
    k2 = jax.random.PRNGKey(1)
    x2 = jax.random.normal(k2, (3, 200, in_features), dtype=jnp.float32)
    out2 = jax.block_until_ready(spectral1d_forward(x2, weights))
    ref2 = jnp.einsum("bsk,ok->bso", x2, weights)
    np.testing.assert_allclose(np.asarray(out2), np.asarray(ref2), rtol=1e-5, atol=1e-5)

    print("KERNEL_OK")
</pallas_src>

<mosaic_0001>
module attributes {stable_mosaic.version = 11 : i64} {
  func.func @_linear_kernel(%arg0: i32, %arg1: memref<16x32xf32, #tpu.memory_space<vmem>>, %arg2: memref<32x32xf32, #tpu.memory_space<vmem>>, %arg3: memref<16x32xf32, #tpu.memory_space<vmem>>) attributes {dimension_semantics = [#tpu.dimension_semantics<parallel>], iteration_bounds = array<i64: 1>, scalar_prefetch = 0 : i64, scratch_operands = 0 : i64, tpu.core_type = #tpu.core_type<tc>, window_params = [{transform_indices = @transform_0, window_bounds = array<i64: 16, 32>}, {pipeline_mode = #tpu.pipeline_mode<synchronous>, transform_indices = @transform_1, window_bounds = array<i64: 32, 32>}, {transform_indices = @transform_2, window_bounds = array<i64: 16, 32>}]} {
    %c0 = arith.constant 0 : index
    %c0_0 = arith.constant 0 : index
    %0 = vector.load %arg1[%c0, %c0_0] : memref<16x32xf32, #tpu.memory_space<vmem>>, vector<16x32xf32>
    %c0_1 = arith.constant 0 : index
    %c0_2 = arith.constant 0 : index
    %1 = vector.load %arg2[%c0_1, %c0_2] : memref<32x32xf32, #tpu.memory_space<vmem>>, vector<32x32xf32>
    %cst = arith.constant dense<0.000000e+00> : vector<16x32xf32>
    %2 = tpu.matmul %0, %1, %cst {dimension_numbers = #tpu.dot_dimension_numbers<[1], [0], [0], [1], [0, 0, 1, 1], [], []>} : vector<16x32xf32>, vector<32x32xf32>, vector<16x32xf32> -> vector<16x32xf32>
    %c0_3 = arith.constant 0 : index
    %c0_4 = arith.constant 0 : index
    %3 = vector.load %arg3[%c0_3, %c0_4] : memref<16x32xf32, #tpu.memory_space<vmem>>, vector<16x32xf32>
    tpu.vector_store %arg3[%c0_3, %c0_4], %2 {strides = array<i32>} : memref<16x32xf32, #tpu.memory_space<vmem>>, vector<16x32xf32>,
    return
  }
  func.func @transform_0(%arg0: i32) -> (i32, i32) {
    %c0_i32 = arith.constant 0 : i32
    %c0_i32_0 = arith.constant 0 : i32
    return %arg0, %c0_i32 : i32, i32
  }
  func.func @transform_1(%arg0: i32) -> (i32, i32) {
    %c0_i32 = arith.constant 0 : i32
    %c0_i32_0 = arith.constant 0 : i32
    %c0_i32_1 = arith.constant 0 : i32
    return %c0_i32, %c0_i32_0 : i32, i32
  }
  func.func @transform_2(%arg0: i32) -> (i32, i32) {
    %c0_i32 = arith.constant 0 : i32
    %c0_i32_0 = arith.constant 0 : i32
    return %arg0, %c0_i32 : i32, i32
  }
}

</mosaic_0001>

<bundles_post_ra>
// kernel: tpu_custom_call.1
= control target key start
LH: loop header
LB: loop body
LE: loop exit
PB: predicated region body
PF: predicated region fallthrough
CT: control target
= control target key end

     0   :  { %7 = vsyncpa [#allocation3], 0  ;;  %s229_s0 = inlined_call_operand.hbm [shape: f32[16,32], index: 0, kind: input, shape index: {}]   ;;  %s230_s1 = inlined_call_operand.hbm [shape: f32[32,32], index: 1, kind: input, shape index: {}]   ;;  %s231_s2 = inlined_call_operand.hbm [shape: f32[16,32], index: 2, kind: output, shape index: {}]  }
   0x1   :  { %8 = vsyncpa [#allocation6], 0 }
   0x2   :  { %9 = vsyncpa [#allocation4], 0  ;;  %s14_s11 = sshll.u32 %s229_s0, 4  ;;  %s191_s12 = smov [#allocation2]   ;;  %s15_s11 = int_to_ptr.hbm [resolvable:$true] %s14_s11 }
   0x3   :  { %s16_s13 = sshll.u32 %s191_s12, 4  ;;  %s27_s16 = sshll.u32 %s230_s1, 4  ;;  %s17_s13 = int_to_ptr.vmem [resolvable:$true] %s16_s13  ;;  %s28_s16 = int_to_ptr.hbm [resolvable:$true] %s27_s16 }
   0x4   :  { %s192_s17 = smov 128   ;;  %s193_s18 = smov 8  }
   0x5   :  { %22 = dma.hbm_to_vmem [thread:$0]  %s15_s11, 256, %s17_s13, [#allocation3], %s192_s17, %s192_s17, %s193_s18  }
   0x6   :  { %s194_s19 = smov [#allocation5]  }
   0x7   :  { %s29_s20 = sshll.u32 %s194_s19, 4  ;;  %s30_s20 = int_to_ptr.vmem [resolvable:$true] %s29_s20 }
   0x8   :  { %35 = dma.hbm_to_vmem [thread:$0]  %s28_s16, 512, %s30_s20, [#allocation6], %s192_s17, %s192_s17, %s193_s18  }
   0x9   :  { %185 = dma.done.wait [#allocation3], 256  }
   0xa   :  { %186 = vsyncadd [#allocation3], 4294967040 }
   0xb   :  { %187 = dma.done.wait [#allocation6], 512  }
   0xc   :  { %188 = vsyncadd [#allocation6], 4294966784  ;;  %v49_v0 = vld [vmem:[#allocation5 + $0x18] sm:$0xff]  ;;  %v48_v1 = vld [vmem:[#allocation5 + $0x10] sm:$0xff]  ;;  %vm50_vm0 = vcmask 261120   ;;  %s195_s0 = smov [#allocation7]  }
   0xd   :  { %69 = vmatpush.msra.mxu0 %v49_v0  ;;  %104 = vmatpush.msra.mxu1 %v49_v0  ;;  %v47_v2 = vld [vmem:[#allocation5 + $0x8] sm:$0xff]  ;;  %v46_v3 = vld [vmem:[#allocation5] sm:$0xff]  ;;  %v44_v4 = vld [vmem:[#allocation2] sm:$0xff]  ;;  %s86_s1 = sshll.u32 %s195_s0, 4  ;;  %s88_s23 = sshll.u32 %s231_s2, 4  ;;  %s87_s1 = int_to_ptr.vmem [resolvable:$true] %s86_s1  ;;  %s89_s23 = int_to_ptr.hbm [resolvable:$true] %s88_s23 }
   0xe   :  { %v45_v5 = vld [vmem:[#allocation2 + $0x8] sm:$0xff] }
   0xf   :  { %70 = vmatpush.msra.mxu0 %v48_v1  ;;  %105 = vmatpush.msra.mxu1 %v48_v1 }
  0x11   :  { %71 = vmatpush.msra.mxu0 %v47_v2  ;;  %106 = vmatpush.msra.mxu1 %v47_v2 }
  0x13   :  { %72 = vmatpush.msra.mxu0 %v46_v3  ;;  %107 = vmatpush.msra.mxu1 %v46_v3 }
  0x14   :  { %102 = vmatmul.msk.f32.vlgmr.msra.gmra.mxu0 %vm50_vm0, %v44_v4  ;;  %103 = vmatmul.msk.f32.vlgmr.msra.gmra.mxu1 %vm50_vm0, %v45_v5 }
  0x91   :  { %v74_v6 = vpop.f32.mrf.mxu0  ;;  %v77_v7 = vpop.f32.mrf.mxu1 }
  0x92   :  { %80 = vst.msk [vmem:[#allocation7] sm:$0xff] %vm50_vm0, %v74_v6 }
  0x93   :  { %81 = vst.msk [vmem:[#allocation7 + $0x8] sm:$0xff] %vm50_vm0, %v77_v7 }
  0x94   :  { %94 = dma.vmem_to_hbm [thread:$0]  %s87_s1, 256, %s89_s23, [#allocation4], %s192_s17, %s192_s17, %s193_s18  }
  0x95   :  { %189 = dma.done.wait [#allocation4], 256  }
  0x96   :  { %190 = vsyncadd [#allocation4], 4294967040 }
  0x97   :  { %99 = vsyncpa [#allocation3], 1 }
  0x98   :  { %100 = vsyncpa [#allocation6], 1 }
  0x99   :  { %101 = vsyncpa [#allocation4], 1 }

</bundles_post_ra>
